<compile_context>
chip_gen: v7x
topology: tpu7x:2x2x1
jax: 0.10.0
libtpu: 0.0.40
codegen_flags: <defaults>
</compile_context>

<pallas_src>
import math

import jax
import jax.numpy as jnp
from jax.experimental import pallas as pl
from jax.experimental.pallas import tpu as pltpu


# ---------------------------------------------------------------------------
# Kernel
# ---------------------------------------------------------------------------
def _make_arcface_kernel(s: float, m: float, block_n: int):
    cos_m = math.cos(m)
    sin_m = math.sin(m)
    mm = sin_m * m
    threshold = math.cos(math.pi - m)

    def arcface_kernel(x_ref, w_ref, inv_xn_ref, inv_wn_ref, lab_ref, out_ref):
        # grid = (out_dim tiles, batch tiles); out_dim tile index is axis 0.
        j = pl.program_id(0)

        # bf16 MXU matmul with f32 accumulation; L2 normalization applied as
        # a post-matmul scale (row scale inv_xn, column scale inv_wn).
        raw = jnp.dot(x_ref[...], w_ref[...],
                      preferred_element_type=jnp.float32)            # [tb, tn]
        cos_t = raw * inv_xn_ref[...] * inv_wn_ref[...]               # [tb, tn] f32

        # Bool mask of the label column, offset by this tile's global column
        # start (correct for every out_dim tile).
        labels = lab_ref[...]                                         # [tb, 1] int32
        col = jax.lax.broadcasted_iota(jnp.int32, cos_t.shape, 1) + j * block_n
        is_label = col == labels                                      # [tb, tn] bool

        # ArcFace margin math only on the label column (per-row scalars).
        # If the label is outside this tile, is_label is all-false, cos_l==0
        # and the correction never reaches out_ref (where picks s*cos_t).
        cos_l = jnp.sum(jnp.where(is_label, cos_t, 0.0),
                        axis=1, keepdims=True)                        # [tb, 1]
        sin_l = jnp.sqrt(jnp.maximum(1.0 - cos_l * cos_l, 0.0))       # clamp vs NaN
        cos_mt = s * (cos_l * cos_m - sin_l * sin_m)
        keep_val = s * (cos_l - mm)
        # relu(cos_t - threshold).to(bool)  ==  cos_t > threshold
        cos_mt_temp = jnp.where(cos_l > threshold, cos_mt, keep_val)  # [tb, 1]

        # output = s*cos_t everywhere except the label column.
        out_ref[...] = jnp.where(is_label, cos_mt_temp,
                                 s * cos_t).astype(out_ref.dtype)

    return arcface_kernel


# ---------------------------------------------------------------------------
# Wrapper helpers
# ---------------------------------------------------------------------------
def _round_up(x: int, mult: int) -> int:
    return ((x + mult - 1) // mult) * mult


def _pick_block_n(out_dim_p: int, max_n: int) -> int:
    """Largest multiple of 128 that divides out_dim_p and is <= max_n."""
    best = 128
    n = 128
    limit = min(out_dim_p, max_n)
    while n <= limit:
        if out_dim_p % n == 0:
            best = n
        n += 128
    return best


def _pick_block_b(batch: int, max_b: int) -> int:
    """All of B if small enough, else the largest multiple-of-8 divisor <= max_b."""
    if batch <= max_b:
        return batch
    best = None
    b = 8
    while b <= max_b:
        if batch % b == 0:
            best = b
        b += 8
    return best if best is not None else batch


def _vmem_cap_bytes() -> int:
    """Per-generation VMEM cap with headroom for compiler-internal scratch."""
    try:
        phys = int(pltpu.get_tpu_info().vmem_capacity_bytes)
    except Exception:
        phys = 64 * 1024 * 1024  # conservative default (v7x per-core VMEM)
    # ~25% headroom below physical; never request more than ~100 MiB
    # (v5e/v6e are 128 MiB, v7x is 64 MiB).
    return min((phys * 3) // 4, 100 * 1024 * 1024)


# ---------------------------------------------------------------------------
# Public entry point
# ---------------------------------------------------------------------------
def arcface_speaker_layer(x, weights, spkid_labels, *, s=30.0, m=0.3,
                          block_b=None, block_n=None, out_dtype=jnp.float32):
    """x: [B, in_dim], weights: [in_dim, out_dim], spkid_labels: [B] int."""
    B, in_dim = x.shape
    in_dim_w, out_dim = weights.shape
    assert in_dim == in_dim_w

    x_f32 = x.astype(jnp.float32)
    w_f32 = weights.astype(jnp.float32)

    # Normalization scales hoisted out of the grid (computed once per call).
    inv_xnorm = jax.lax.rsqrt(
        jnp.sum(x_f32 * x_f32, axis=1, keepdims=True))                # [B, 1]
    inv_wnorm = jax.lax.rsqrt(
        jnp.sum(w_f32 * w_f32, axis=0, keepdims=True))                # [1, out_dim]

    # Pad K and N to multiples of 128 so every tile stays lane/sublane dense.
    # Zero K/N padding is exact (contributes 0 to the dot; norms use the
    # unpadded arrays above); inv_wnorm pads with 1 and padded logits are
    # sliced off at the end.
    in_dim_p = _round_up(in_dim, 128)
    out_dim_p = _round_up(out_dim, 128)
    pad_k = in_dim_p - in_dim
    pad_n = out_dim_p - out_dim
    if pad_k:
        x_f32 = jnp.pad(x_f32, ((0, 0), (0, pad_k)))
    if pad_k or pad_n:
        w_f32 = jnp.pad(w_f32, ((0, pad_k), (0, pad_n)))
    if pad_n:
        inv_wnorm = jnp.pad(inv_wnorm, ((0, 0), (0, pad_n)), constant_values=1.0)

    # bf16 inputs for the MXU: halves the dominant HBM stream (W).
    x_bf16 = x_f32.astype(jnp.bfloat16)
    w_bf16 = w_f32.astype(jnp.bfloat16)
    labels_2d = spkid_labels.astype(jnp.int32).reshape(B, 1)

    # Block sizes: large enough that per-grid-step overhead is amortized.
    if block_b is None:
        block_b = _pick_block_b(B, 512)
    if block_n is None:
        block_n = _pick_block_n(out_dim_p, 2048)
    assert B % block_b == 0 and (block_b % 8 == 0 or block_b == B)
    assert out_dim_p % block_n == 0 and (block_n % 128 == 0 or block_n == out_dim_p)

    out_bytes = jnp.dtype(out_dtype).itemsize

    def _est_bytes(bb, bn):
        return (2 * bb * in_dim_p * 2            # x bf16   (double-buffered)
                + 2 * in_dim_p * bn * 2          # W bf16   (double-buffered)
                + 2 * (2 * bb + bn) * 4          # inv_xn, labels, inv_wn
                + 2 * bb * bn * out_bytes        # output   (double-buffered)
                + 6 * bb * bn * 4)               # f32 intermediates headroom

    vmem_cap = _vmem_cap_bytes()
    # Auto-shrink blocks if the estimate overshoots the per-chip budget.
    while _est_bytes(block_b, block_n) > vmem_cap:
        if block_n > 128:
            block_n = _pick_block_n(out_dim_p, block_n // 2)
        elif (block_b > 8 and block_b % 16 == 0 and B % (block_b // 2) == 0):
            block_b //= 2
        else:
            break
    vmem_limit = int(min(max(_est_bytes(block_b, block_n), 16 * 1024 * 1024),
                         vmem_cap))

    # Grid: out_dim tiles outer (sharded across TCs on v7x -> disjoint halves
    # of W per core), batch tiles inner (W block index constant across inner
    # iterations -> each W tile is DMA'd from HBM exactly once).
    grid = (out_dim_p // block_n, B // block_b)
    kernel = _make_arcface_kernel(float(s), float(m), int(block_n))

    out_padded = pl.pallas_call(
        kernel,
        out_shape=jax.ShapeDtypeStruct((B, out_dim_p), out_dtype),
        grid=grid,
        in_specs=[
            pl.BlockSpec((block_b, in_dim_p), lambda j, i: (i, 0)),   # x (bf16)
            pl.BlockSpec((in_dim_p, block_n), lambda j, i: (0, j)),   # W (bf16)
            pl.BlockSpec((block_b, 1), lambda j, i: (i, 0)),          # inv_xnorm
            pl.BlockSpec((1, block_n), lambda j, i: (0, j)),          # inv_wnorm
            pl.BlockSpec((block_b, 1), lambda j, i: (i, 0)),          # labels
        ],
        out_specs=pl.BlockSpec((block_b, block_n), lambda j, i: (i, j)),
        compiler_params=pltpu.CompilerParams(
            dimension_semantics=("parallel", "parallel"),
            vmem_limit_bytes=vmem_limit,
        ),
    )(x_bf16, w_bf16, inv_xnorm, inv_wnorm, labels_2d)

    return out_padded[:, :out_dim] if pad_n else out_padded


# ---------------------------------------------------------------------------
# References
# ---------------------------------------------------------------------------
def _margin_blend(cos_t, labels, out_dim, s, m):
    cos_m = math.cos(m)
    sin_m = math.sin(m)
    mm = sin_m * m
    threshold = math.cos(math.pi - m)
    sin_t = jnp.sqrt(jnp.maximum(1.0 - cos_t * cos_t, 0.0))
    cos_mt = s * (cos_t * cos_m - sin_t * sin_m)
    keep_val = s * (cos_t - mm)
    cos_mt_temp = jnp.where(cos_t > threshold, cos_mt, keep_val)
    mask = jax.nn.one_hot(labels, out_dim, dtype=jnp.float32)
    return s * cos_t * (1.0 - mask) + cos_mt_temp * mask


def _reference_f32(x, weights, labels, s=30.0, m=0.3):
    # Exact PyTorch-module semantics, all float32.
    xn = x / jnp.linalg.norm(x, axis=1, keepdims=True)
    wn = weights / jnp.linalg.norm(weights, axis=0, keepdims=True)
    cos_t = xn @ wn
    return _margin_blend(cos_t, labels, weights.shape[1], s, m)


def _reference_matched(x, weights, labels, s=30.0, m=0.3):
    # Same numerical recipe as the kernel (bf16 MXU inputs, f32 accumulation,
    # post-matmul normalization with f32 norms).
    inv_xn = jax.lax.rsqrt(jnp.sum(x * x, axis=1, keepdims=True))
    inv_wn = jax.lax.rsqrt(jnp.sum(weights * weights, axis=0, keepdims=True))
    raw = jnp.dot(x.astype(jnp.bfloat16), weights.astype(jnp.bfloat16),
                  preferred_element_type=jnp.float32)
    cos_t = raw * inv_xn * inv_wn
    return _margin_blend(cos_t, labels, weights.shape[1], s, m)


# ---------------------------------------------------------------------------
# Demo / self-check
# ---------------------------------------------------------------------------
if __name__ == "__main__":
    s_val, m_val = 30.0, 0.3
    key = jax.random.PRNGKey(0)

    # --- Test 1: aligned shapes, explicit small blocks -> grid = (2, 2) ----
    B, in_dim, out_dim = 16, 128, 512
    k1, k2, k3, k4, k5, k6 = jax.random.split(key, 6)

    x = jax.random.normal(k1, (B, in_dim), dtype=jnp.float32)
    bound = math.sqrt(6.0 / (in_dim + out_dim))          # xavier_uniform_
    weights = jax.random.uniform(k2, (in_dim, out_dim), dtype=jnp.float32,
                                 minval=-bound, maxval=bound)
    spkid_labels = jax.random.randint(k3, (B,), 0, out_dim, dtype=jnp.int32)

    out = arcface_speaker_layer(x, weights, spkid_labels, s=s_val, m=m_val,
                                block_b=8, block_n=256)
    out = jax.block_until_ready(out)
    assert out.shape == (B, out_dim)

    ref_matched = _reference_matched(x, weights, spkid_labels, s=s_val, m=m_val)
    assert jnp.allclose(out, ref_matched, atol=2e-3, rtol=1e-3), \
        "mismatch vs matched (bf16-matmul) reference"

    ref_f32 = _reference_f32(x, weights, spkid_labels, s=s_val, m=m_val)
    assert jnp.allclose(out, ref_f32, atol=0.5, rtol=0.0), \
        "mismatch vs f32 reference beyond bf16 tolerance"

    # --- Test 2: unaligned in_dim/out_dim -> exercises K/N padding path ----
    B2, in2, out2 = 8, 96, 300
    x2 = jax.random.normal(k4, (B2, in2), dtype=jnp.float32)
    bound2 = math.sqrt(6.0 / (in2 + out2))
    w2 = jax.random.uniform(k5, (in2, out2), dtype=jnp.float32,
                            minval=-bound2, maxval=bound2)
    lab2 = jax.random.randint(k6, (B2,), 0, out2, dtype=jnp.int32)

    out_2 = jax.block_until_ready(
        arcface_speaker_layer(x2, w2, lab2, s=s_val, m=m_val))
    assert out_2.shape == (B2, out2)
    ref2 = _reference_matched(x2, w2, lab2, s=s_val, m=m_val)
    assert jnp.allclose(out_2, ref2, atol=2e-3, rtol=1e-3), \
        "mismatch on padded (unaligned) shapes"

    print("KERNEL_OK")
</pallas_src>

<mosaic_0001>
module attributes {stable_mosaic.version = 11 : i64} {
  func.func @arcface_kernel(%arg0: i32, %arg1: i32, %arg2: memref<8x128xbf16, #tpu.memory_space<vmem>>, %arg3: memref<128x256xbf16, #tpu.memory_space<vmem>>, %arg4: memref<8x1xf32, #tpu.memory_space<vmem>>, %arg5: memref<1x256xf32, #tpu.memory_space<vmem>>, %arg6: memref<8x1xi32, #tpu.memory_space<vmem>>, %arg7: memref<8x256xf32, #tpu.memory_space<vmem>>) attributes {dimension_semantics = [#tpu.dimension_semantics<parallel>, #tpu.dimension_semantics<parallel>], iteration_bounds = array<i64: 2, 2>, scalar_prefetch = 0 : i64, scratch_operands = 0 : i64, tpu.core_type = #tpu.core_type<tc>, window_params = [{transform_indices = @transform_0, window_bounds = array<i64: 8, 128>}, {transform_indices = @transform_1, window_bounds = array<i64: 128, 256>}, {transform_indices = @transform_2, window_bounds = array<i64: 8, 1>}, {transform_indices = @transform_3, window_bounds = array<i64: 1, 256>}, {transform_indices = @transform_4, window_bounds = array<i64: 8, 1>}, {transform_indices = @transform_5, window_bounds = array<i64: 8, 256>}]} {
    %c0 = arith.constant 0 : index
    %c0_0 = arith.constant 0 : index
    %0 = vector.load %arg2[%c0, %c0_0] : memref<8x128xbf16, #tpu.memory_space<vmem>>, vector<8x128xbf16>
    %c0_1 = arith.constant 0 : index
    %c0_2 = arith.constant 0 : index
    %1 = vector.load %arg3[%c0_1, %c0_2] : memref<128x256xbf16, #tpu.memory_space<vmem>>, vector<128x256xbf16>
    %cst = arith.constant dense<0.000000e+00> : vector<8x256xf32>
    %2 = tpu.matmul %0, %1, %cst {dimension_numbers = #tpu.dot_dimension_numbers<[1], [0], [0], [1], [0, 0, 1, 1], [], []>} : vector<8x128xbf16>, vector<128x256xbf16>, vector<8x256xf32> -> vector<8x256xf32>
    %c0_3 = arith.constant 0 : index
    %c0_4 = arith.constant 0 : index
    %3 = vector.load %arg4[%c0_3, %c0_4] : memref<8x1xf32, #tpu.memory_space<vmem>>, vector<8x1xf32>
    %4 = vector.broadcast %3 : vector<8x1xf32> to vector<8x256xf32>
    %5 = arith.mulf %2, %4 : vector<8x256xf32>
    %c0_5 = arith.constant 0 : index
    %c0_6 = arith.constant 0 : index
    %6 = vector.load %arg5[%c0_5, %c0_6] : memref<1x256xf32, #tpu.memory_space<vmem>>, vector<1x256xf32>
    %7 = vector.broadcast %6 : vector<1x256xf32> to vector<8x256xf32>
    %8 = arith.mulf %5, %7 : vector<8x256xf32>
    %c0_7 = arith.constant 0 : index
    %c0_8 = arith.constant 0 : index
    %9 = vector.load %arg6[%c0_7, %c0_8] : memref<8x1xi32, #tpu.memory_space<vmem>>, vector<8x1xi32>
    %10 = tpu.iota {dimensions = array<i32: 1>} : vector<8x256xi32>
    %c256_i32 = arith.constant 256 : i32
    %11 = arith.muli %arg0, %c256_i32 : i32
    %12 = vector.broadcast %11 : i32 to vector<8x256xi32>
    %13 = arith.addi %10, %12 : vector<8x256xi32>
    %14 = vector.broadcast %9 : vector<8x1xi32> to vector<8x256xi32>
    %15 = arith.cmpi eq, %13, %14 : vector<8x256xi32>
    %cst_9 = arith.constant 0.000000e+00 : f32
    %16 = vector.broadcast %cst_9 : f32 to vector<8x256xf32>
    %17 = arith.select %15, %8, %16 : vector<8x256xi1>, vector<8x256xf32>
    %cst_10 = arith.constant dense<0.000000e+00> : vector<8xf32>
    %18 = vector.multi_reduction <add>, %17, %cst_10 [1] : vector<8x256xf32> to vector<8xf32>
    %19 = vector.shape_cast %18 : vector<8xf32> to vector<8x1xf32>
    %20 = arith.mulf %19, %19 : vector<8x1xf32>
    %cst_11 = arith.constant 1.000000e+00 : f32
    %21 = vector.broadcast %cst_11 : f32 to vector<8x1xf32>
    %22 = arith.subf %21, %20 : vector<8x1xf32>
    %cst_12 = arith.constant 0.000000e+00 : f32
    %23 = vector.broadcast %cst_12 : f32 to vector<8x1xf32>
    %24 = arith.maximumf %22, %23 : vector<8x1xf32>
    %25 = math.sqrt %24 : vector<8x1xf32>
    %cst_13 = arith.constant 0.955336511 : f32
    %26 = vector.broadcast %cst_13 : f32 to vector<8x1xf32>
    %27 = arith.mulf %19, %26 : vector<8x1xf32>
    %cst_14 = arith.constant 0.295520216 : f32
    %28 = vector.broadcast %cst_14 : f32 to vector<8x1xf32>
    %29 = arith.mulf %25, %28 : vector<8x1xf32>
    %30 = arith.subf %27, %29 : vector<8x1xf32>
    %cst_15 = arith.constant 3.000000e+01 : f32
    %31 = vector.broadcast %cst_15 : f32 to vector<8x1xf32>
    %32 = arith.mulf %31, %30 : vector<8x1xf32>
    %cst_16 = arith.constant 0.0886560603 : f32
    %33 = vector.broadcast %cst_16 : f32 to vector<8x1xf32>
    %34 = arith.subf %19, %33 : vector<8x1xf32>
    %cst_17 = arith.constant 3.000000e+01 : f32
    %35 = vector.broadcast %cst_17 : f32 to vector<8x1xf32>
    %36 = arith.mulf %35, %34 : vector<8x1xf32>
    %cst_18 = arith.constant -0.955336511 : f32
    %37 = vector.broadcast %cst_18 : f32 to vector<8x1xf32>
    %38 = arith.cmpf ogt, %19, %37 : vector<8x1xf32>
    %39 = arith.select %38, %32, %36 : vector<8x1xi1>, vector<8x1xf32>
    %cst_19 = arith.constant 3.000000e+01 : f32
    %40 = vector.broadcast %cst_19 : f32 to vector<8x256xf32>
    %41 = arith.mulf %40, %8 : vector<8x256xf32>
    %42 = vector.shape_cast %39 : vector<8x1xf32> to vector<8x1xf32>
    %43 = vector.broadcast %42 : vector<8x1xf32> to vector<8x256xf32>
    %44 = arith.select %15, %43, %41 : vector<8x256xi1>, vector<8x256xf32>
    %c0_20 = arith.constant 0 : index
    %c0_21 = arith.constant 0 : index
    %45 = vector.load %arg7[%c0_20, %c0_21] : memref<8x256xf32, #tpu.memory_space<vmem>>, vector<8x256xf32>
    tpu.vector_store %arg7[%c0_20, %c0_21], %44 {strides = array<i32>} : memref<8x256xf32, #tpu.memory_space<vmem>>, vector<8x256xf32>,
    return
  }
  func.func @transform_0(%arg0: i32, %arg1: i32) -> (i32, i32) {
    %c0_i32 = arith.constant 0 : i32
    %c0_i32_0 = arith.constant 0 : i32
    return %arg1, %c0_i32 : i32, i32
  }
  func.func @transform_1(%arg0: i32, %arg1: i32) -> (i32, i32) {
    %c0_i32 = arith.constant 0 : i32
    %c0_i32_0 = arith.constant 0 : i32
    return %c0_i32, %arg0 : i32, i32
  }
  func.func @transform_2(%arg0: i32, %arg1: i32) -> (i32, i32) {
    %c0_i32 = arith.constant 0 : i32
    %c0_i32_0 = arith.constant 0 : i32
    return %arg1, %c0_i32 : i32, i32
  }
  func.func @transform_3(%arg0: i32, %arg1: i32) -> (i32, i32) {
    %c0_i32 = arith.constant 0 : i32
    %c0_i32_0 = arith.constant 0 : i32
    return %c0_i32, %arg0 : i32, i32
  }
  func.func @transform_4(%arg0: i32, %arg1: i32) -> (i32, i32) {
    %c0_i32 = arith.constant 0 : i32
    %c0_i32_0 = arith.constant 0 : i32
    return %arg1, %c0_i32 : i32, i32
  }
  func.func @transform_5(%arg0: i32, %arg1: i32) -> (i32, i32) {
    %c0_i32 = arith.constant 0 : i32
    return %arg1, %arg0 : i32, i32
  }
}

</mosaic_0001>

<bundles_post_ra>
// kernel: tpu_custom_call.1
= control target key start
LH: loop header
LB: loop body
LE: loop exit
PB: predicated region body
PF: predicated region fallthrough
CT: control target
= control target key end

     0   :  { %10 = vsyncpa [#allocation3], 0  ;;  %s1307_s0 = inlined_call_operand.vmem [shape: bf16[16,128], index: 0, kind: input, shape index: {}]   ;;  %s1308_s1 = inlined_call_operand.hbm [shape: bf16[128,512], index: 1, kind: input, shape index: {}]   ;;  %s1309_s2 = inlined_call_operand.vmem [shape: f32[16,1], index: 2, kind: input, shape index: {}]   ;;  %s1310_s3 = inlined_call_operand.vmem [shape: f32[1,512], index: 3, kind: input, shape index: {}]   ;;  %s1311_s4 = inlined_call_operand.vmem [shape: s32[16,1], index: 4, kind: input, shape index: {}]   ;;  %s1312_s5 = inlined_call_operand.hbm [shape: f32[16,512], index: 5, kind: output, shape index: {}]  }
   0x1   :  { %12 = vsyncpa [#allocation3 + $0x1], 0 }
   0x2   :  { %13 = vsyncpa [#allocation4], 0 }
   0x3   :  { %15 = vsyncpa [#allocation4 + $0x1], 0  ;;  %s1040_s18 = smov 0   ;;  %s1042_s19 = smov 0  }
   0x4   :  { %s1044_s20 = smov 0   ;;  %s1046_s21 = smov 0  }
   0x5   :  { %s1048_s22 = smov 0   ;;  %s1050_s23 = smov 0  }
   0x6   :  { %s1052_s24 = smov 0   ;;  %s1054_s25 = smov 0  }
   0x7   :  { %s1056_s26 = smov 0   ;;  %s1058_s27 = smov 0  }
   0x8   :  { %s1060_s28 = smov 0  }
   0x9 LB: > { %1317 = sst [smem:[#allocation8_spill]] %s998_s27  ;;  %s678_s29 = sadd.s32 4294967295, %s1002_s28   ;;  %s1002_s28 = sphi %s1060_s28, %s21_s28   ;;  %s998_s27 = sphi %s1058_s27, %s1329_s27   ;;  %s994_s26 = sphi %s1056_s26, %s1337_s26   ;;  %s990_s25 = sphi %s1054_s25, %s1327_s25   ;;  %s986_s24 = sphi %s1052_s24, %s1336_s24   ;;  %s982_s23 = sphi %s1050_s23, %s1335_s23   ;;  %s978_s22 = sphi %s1048_s22, %s1334_s22   ;;  %s974_s21 = sphi %s1046_s21, %s1333_s21   ;;  %s970_s20 = sphi %s1044_s20, %s1332_s20   ;;  %s966_s19 = sphi %s1042_s19, %s1331_s19   ;;  %s962_s18 = sphi %s1040_s18, %s1330_s18  }
   0xa   : > { %s679_s30 = sadd.s32 4294967294, %s1002_s28   ;;  %s30_s6 = sadd.s32 1, %s994_s26 }
   0xb   : > { %s33_s7 = sadd.s32 1, %s998_s27  ;;  %p31_p0 = scmp.ge.s32.totalorder %s30_s6, 2 }
   0xc   : > { %s66_s8 = sadd.s32 1, %s982_s23  ;;  %p73_p1 = scmp.ne.s32.totalorder %s982_s23, %s978_s22 }
   0xd   : > { %p74_p2 = scmp.eq.s32.totalorder %s1002_s28, 0  ;;  %s1339_s6 = smov (%p31_p0, %s30_s6), 0 }
   0xe   : > { %1318 = sst [smem:[#allocation9_spill]] %s1339_s6  ;;  %s1341_s7 = smov (!%p31_p0, %s33_s7), %s998_s27 }
   0xf   : > { %p1104_p3 = por %p74_p2, %p73_p1  ;;  %p79_p4 = scmp.ne.s32.totalorder %s978_s22, %s974_s21 }
  0x10   : > { %p35_p5 = scmp.ge.s32.totalorder %s1341_s7, 2  ;;  %p80_p6 = scmp.eq.s32.totalorder %s678_s29, 0 }
  0x11   : > { %s167_s10 = ssub.s32 %s994_s26, %s1339_s6  ;;  %s172_s11 = sadd.s32 1, %s970_s20 }
  0x12   : > { %s1343_s7 = smov (%p35_p5, %s1341_s7), 0  ;;  %p1114_p7 = por %p80_p6, %p79_p4 }
  0x13   : > { %1320 = sst [smem:[#allocation10_spill]] %s1343_s7  ;;  %p182_p8 = scmp.ne.s32.totalorder %s970_s20, %s966_s19 }
  0x14   : > { %s63_s13 = ssub.s32 %s998_s27, %s1343_s7  ;;  %p183_p9 = scmp.eq.s32.totalorder %s678_s29, 3 }
  0x15   : > { %p64_p10 = scmp.eq.s32.totalorder %s63_s13, 0  ;;  %s169_s14 = sor.u32 %s167_s10, %s63_s13 }
  0x16   : > { %p170_p11 = scmp.eq.s32.totalorder %s169_s14, 0  ;;  %p1122_p12 = por %p183_p9, %p182_p8 }
  0x17   : > { %s1127_s16 = scalar_select %p64_p10, %s982_s23, %s66_s8  }
  0x18   : > { %s1322_s15 = scalar_select %p1122_p12, 1, 0 }
  0x19   : > { %s1130_s17 = scalar_select %p170_p11, %s970_s20, %s172_s11  }
  0x1a   : > { %p188_p13 = scmp.ne.s32.totalorder %s966_s19, %s962_s18  ;;  %p189_p0 = scmp.eq.s32.totalorder %s679_s30, 3 }
  0x1b   : > { %p729_p1 = scmp.lt.s32.totalorder %s1002_s28, 4  ;;  %s216_s29 = sand.u32 1, %s982_s23  }
  0x1c   : > { %p1135_p2 = por %p189_p0, %p188_p13  ;;  %s682_s7 = sshll.u32 %s216_s29, 7 }
  0x1d   : > { %s716_s10 = sshll.u32 %s998_s27, 7  ;;  %s220_s8 = scalar_lea.vmem [#allocation2], %s682_s7 }
  0x1e   : > { %s1323_s21 = scalar_select %p1135_p2, 1, 0 }
  0x1f   : > { %s1144_s6 = scalar_lea.hbm %s1308_s1, %s716_s10  ;;  %s227_s11 = sshll.u32 %s220_s8, 4  ;;  %s1146_s11 = int_to_ptr.vmem [resolvable:$true] %s227_s11 }
  0x20   : > { %p1150_p4 = pnand %p729_p1, %p1104_p3  ;;  %s1154_s27 = scalar_lea.sflag [#allocation3], %s216_s29 }
  0x21   : > { %s850_s13 = scalar_lea.hbm %s1144_s6, 2048  ;;  %s855_s9 = scalar_lea.hbm %s1308_s1, 4096 }
  0x22   : > { %p851_p5 = scmp.ne.s32.totalorder %s1144_s6, %s850_s13  ;;  %p852_p6 = pneg %p1150_p4 }
  0x23   : > { %p856_p3 = scmp.lt.u32.totalorder %s1144_s6, %s1308_s1  ;;  %p857_p10 = scmp.lt.u32.totalorder %s855_s9, %s850_s13 }
  0x24   : > { %p853_p8 = pnand %p852_p6, %p851_p5  ;;  %p859_p13 = scmp.lt.u32.totalorder %s850_s13, %s1144_s6 }
  0x25   : > { %p858_p11 = por %p857_p10, %p856_p3 }
  0x26   : > { %p854_p9 = pneg %p853_p8 }
  0x27   : > { %p860_p0 = por %p859_p13, %p858_p11 }
  0x29   : > { %p861_p1 = pnand %p860_p0, %p854_p9 }
  0x2b   : > { %864 = shalt.err (!%p861_p1)
}
  0x2c   : > { %s865_s29 = scalar_lea.vmem %s1146_s11, 2048  ;;  %s1004_s7 = smov [#allocation2]  }
  0x2d   : > { %p866_p5 = scmp.ne.s32.totalorder %s1146_s11, %s865_s29  ;;  %s870_s10 = sshll.u32 %s1004_s7, 4  ;;  %s871_s10 = int_to_ptr.vmem [resolvable:$false] %s870_s10 }
  0x2e   : > { %s872_s14 = scalar_lea.vmem %s871_s10, 4096  ;;  %p873_p12 = scmp.lt.s32.totalorder %s1146_s11, %s871_s10 }
  0x2f   : > { %p868_p8 = pnand %p866_p5, %p852_p6  ;;  %p874_p3 = scmp.lt.s32.totalorder %s872_s14, %s865_s29 }
  0x31   : > { %p869_p2 = pneg %p868_p8  ;;  %p875_p10 = por %p874_p3, %p873_p12 }
  0x33   : > { %p876_p11 = pnand %p875_p10, %p869_p2 }
  0x35   : > { %879 = shalt.err (!%p876_p11)
}
  0x36   : > { %s1005_s13 = smov 256   ;;  %s1006_s9 = smov 128  }
  0x37   : > { %s1007_s8 = smov 8   ;;  %p685_p6 = scmp.ge.s32.totalorder %s1002_s28, 1 }
  0x38   : > { %724 = dma.hbm_to_vmem [thread:$0]  (!%p1150_p4), %s1144_s6, 2048, %s1146_s11, %s1154_s27, %s1005_s13, %s1006_s9, %s1007_s8  }
  0x39   : > { %p257_p9 = scmp.lt.s32.totalorder %s1002_s28, 5 }
  0x3b   : > { %p258_p13 = pnand %p685_p6, %p257_p9 }
  0x3c   : > { %s263_s29 = sand.u32 (!%p258_p13), 1, %s978_s22  }
  0x3d   : > { %261 = sbr.rel (%p258_p13) target bundleno = 508 (0x1fc), region = 40  ;;  %s686_s7 = sshll.u32 (!%p258_p13), %s263_s29, 7 }
  0x3e   : > { %s264_s10 = scalar_lea.sflag (!%p258_p13), [#allocation3], %s263_s29  ;;  %s1185_s14 = scalar_lea.vmem (!%p258_p13), [#allocation2], %s686_s7 }
  0x44   : > { %953 = dma.done.wait (%p1114_p7), %s264_s10, 2048  }
  0x45   : > { %955 = vsyncadd (%p1114_p7), %s264_s10, 4294965248  ;;  %v1008_v0 = vmov 0   ;;  %p310_p12 = scmp.lt.s32.totalorder %s986_s24, 1  ;;  %v824_v1 = vld [vmem:[%s1185_s14 + $0x4] ss:$8 sps:$4 sm:$0xff]   ;;  %s1223_s12 = sshll.u32 %s990_s25, 1  ;;  %v478_v20 = vlaneseq }
  0x46   : > { %459 = vmatprep.mubr.bf16.mxu0 %v1008_v0  ;;  %823 = vset.pattern.permute.xlu0 %v1008_v0  ;;  %v826_v2 = vld [vmem:[%s1185_s14] ss:$8 sps:$4 sm:$0xff]   ;;  %v827_v3 = vld [vmem:[%s1185_s14 + $0x14] ss:$8 sps:$4 sm:$0xff]   ;;  %v829_v4 = vld [vmem:[%s1185_s14 + $0x10] ss:$8 sps:$4 sm:$0xff]  }
  0x47   : > { %427 = vmatprep.subr.bf16.mxu0 %v824_v1  ;;  %s1197_s27 = scalar_select %p310_p12, %s986_s24, 1  ;;  %v830_v5 = vld [vmem:[%s1185_s14 + $0x24] ss:$8 sps:$4 sm:$0xff]   ;;  %v832_v6 = vld [vmem:[%s1185_s14 + $0x20] ss:$8 sps:$4 sm:$0xff]   ;;  %v479_v21 = vshrl.u32 %v478_v20, 7 }
  0x48   : > { %428 = vmatpush1.bf16.msra.mxu0 %v826_v2  ;;  %v833_v7 = vld [vmem:[%s1185_s14 + $0x34] ss:$8 sps:$4 sm:$0xff]   ;;  %v835_v8 = vld [vmem:[%s1185_s14 + $0x30] ss:$8 sps:$4 sm:$0xff]   ;;  %v836_v10 = vld [vmem:[%s1185_s14 + $0x44] ss:$8 sps:$4 sm:$0xff]  }
  0x49   : > { %429 = vmatprep.subr.bf16.mxu0 %v827_v3  ;;  %s689_s6 = sshll.u32 %s1197_s27, 3  ;;  %v838_v12 = vld [vmem:[%s1185_s14 + $0x40] ss:$8 sps:$4 sm:$0xff]   ;;  %v839_v13 = vld [vmem:[%s1185_s14 + $0x54] ss:$8 sps:$4 sm:$0xff]   ;;  %s688_s29 = sshll.u32 %s1197_s27, 2 }
  0x4a   : > { %s318_s30 = scalar_lea.vmem %s1309_s2, %s689_s6  ;;  %s327_s8 = scalar_lea.vmem %s1311_s4, %s689_s6  ;;  %v841_v14 = vld [vmem:[%s1185_s14 + $0x50] ss:$8 sps:$4 sm:$0xff]   ;;  %v842_v15 = vld [vmem:[%s1185_s14 + $0x64] ss:$8 sps:$4 sm:$0xff]   ;;  %v844_v16 = vld [vmem:[%s1185_s14 + $0x60] ss:$8 sps:$4 sm:$0xff]  }
  0x4b   : > { %v468_v9 = vld [vmem:[%s318_s30] sm:$0xff]  ;;  %v845_v17 = vld [vmem:[%s1185_s14 + $0x74] ss:$8 sps:$4 sm:$0xff]   ;;  %v847_v18 = vld [vmem:[%s1185_s14 + $0x70] ss:$8 sps:$4 sm:$0xff]   ;;  %s313_s6 = scalar_lea.vmem %s1307_s0, %s688_s29  ;;  %p320_p7 = scmp.lt.s32.totalorder %s1223_s12, 3 }
  0x4c   : > { %430 = vmatpush1.bf16.msra.mxu0 %v829_v4  ;;  %471 = vperm.xlu0 %823, %v468_v9   ;;  %v490_v11 = vld [vmem:[%s327_s8] sm:$0xff]  ;;  %v492_v22 = vand.u32 127, %v478_v20  ;;  %s708_s13 = sshll.u32 %s990_s25, 8  ;;  %v480_v24 = vsub.s32 0, %v479_v21  ;;  %v484_v26 = vsub.s32 1, %v479_v21  ;;  %s307_s25 = sand.u32 1, %s966_s19  }
  0x4d   : > { %431 = vmatprep.subr.bf16.mxu0 %v830_v5  ;;  %v330_v19 = vld [vmem:[%s313_s6] sm:$0xf]  ;;  %s321_s11 = scalar_select %p320_p7, %s1223_s12, 3  ;;  %v495_v28 = vstv %s708_s13 }
  0x4e   : > { %v493_v27 = vadd.s32 128, %v492_v22  ;;  %v496_v30 = vadd.s32 %v495_v28, %v492_v22  ;;  %s687_s9 = sshll.u32 %s307_s25, 4  ;;  %s712_s8 = sshll.u32 %s986_s24, 2 }
  0x4f   : > { %s322_s14 = scalar_lea.vmem %s1310_s3, %s321_s11  ;;  %s545_s29 = sadd.s32 %s712_s8, %s1223_s12 }
  0x50   : > { %432 = vmatpush1.bf16.msra.mxu0 %v832_v6  ;;  %499 = vperm.xlu0 %823, %v490_v11   ;;  %v476_v25 = vld [vmem:[%s322_s14] sm:$0x3]  ;;  %v497_v33 = vadd.s32 %v495_v28, %v493_v27  ;;  %s713_s7 = sshll.u32 %s545_s29, 7  ;;  %s309_s10 = scalar_lea.vmem [#allocation5], %s687_s9 }
  0x51   : > { %433 = vmatprep.subr.bf16.mxu0 %v833_v7  ;;  %v481_v29 = vrot.slane %v476_v25, %v480_v24  ;;  %v485_v32 = vrot.slane %v476_v25, %v484_v26  ;;  %s549_s6 = sshll.u32 %s309_s10, 4  ;;  %s1241_s27 = scalar_lea.hbm %s1312_s5, %s713_s7  ;;  %s1243_s6 = int_to_ptr.vmem [resolvable:$true] %s549_s6 }
  0x52   : > { %s533_s12 = scalar_lea.sflag [#allocation4], %s307_s25  ;;  %s880_s30 = scalar_lea.vmem %s1243_s6, 256 }
  0x53   : > { %p881_p2 = scmp.ne.s32.totalorder %s1243_s6, %s880_s30  ;;  %p1325_p4 = scmp.ne.s32.totalorder %s1322_s15, 0 }
  0x54   : > { %434 = vmatpush1.bf16.msra.mxu0 %v835_v8  ;;  %s1009_s14 = smov [#allocation5]  }
  0x55   : > { %435 = vmatprep.subr.bf16.mxu0 %v836_v10  ;;  %p882_p0 = pnand %p881_p2, %p1325_p4  ;;  %s884_s13 = sshll.u32 %s1009_s14, 4  ;;  %s885_s13 = int_to_ptr.vmem [resolvable:$false] %s884_s13 }
  0x56   : > { %s886_s9 = scalar_lea.vmem %s885_s13, 512  ;;  %p887_p5 = scmp.lt.s32.totalorder %s1243_s6, %s885_s13 }
  0x57   : > { %p883_p1 = pneg %p882_p0  ;;  %p888_p8 = scmp.lt.s32.totalorder %s886_s9, %s880_s30 }
  0x58   : > { %436 = vmatpush1.bf16.msra.mxu0 %v838_v12 }
  0x59   : > { %437 = vmatprep.subr.bf16.mxu0 %v839_v13  ;;  %p889_p3 = por %p888_p8, %p887_p5 }
  0x5b   : > { %p890_p10 = pnand %p889_p3, %p883_p1 }
  0x5c   : > { %438 = vmatpush1.bf16.msra.mxu0 %v841_v14 }
  0x5d   : > { %439 = vmatprep.subr.bf16.mxu0 %v842_v15 }
  0x60   : > { %440 = vmatpush1.bf16.msra.mxu0 %v844_v16 }
  0x61   : > { %441 = vmatprep.subr.bf16.mxu0 %v845_v17 }
  0x64   : > { %442 = vmatpush1.bf16.msra.mxu0 %v847_v18 }
  0x67   : > { %460 = vmatmul.mubr.bf16.vlgmr.msra.gmra.mrb[0].mxu0 %v330_v19 }
  0xcb   : > { %v472_v23 = vpop.permute.xlu0 %471 }
  0xcf   : > { %v500_v34 = vpop.permute.xlu0 %499 }
  0xd0   : > { %vm501_vm0 = vcmp.eq.s32.totalorder %v496_v30, %v500_v34  ;;  %vm502_vm1 = vcmp.eq.s32.totalorder %v497_v33, %v500_v34 }
 0x13a   : > { %v461_v31 = vpop.f32.mrb[0].mxu0 }
 0x13b   : > { %v474_v35 = vmul.f32 %v472_v23, %v461_v31  ;;  %v463_v36 = vpop.f32.mrb[1].mxu0 }
 0x13c   : > { %v475_v37 = vmul.f32 %v472_v23, %v463_v36  ;;  %v465_v38 = vpop.f32.mrb[2].mxu0 }
 0x13d   : > { %v488_v39 = vmul.f32 %v481_v29, %v474_v35  ;;  %v466_v40 = vpop.f32.mrb[3].mxu0 }
 0x13e   : > { %v489_v41 = vmul.f32 %v485_v32, %v475_v37 }
 0x13f   : > { %v503_v42 = vsel %vm501_vm0, %v488_v39, 0.0  ;;  %v526_v60 = vmul.f32 30.0, %v488_v39 }
 0x140   : > { %v504_v43 = vsel %vm502_vm1, %v489_v41, 0.0  ;;  %v527_v61 = vmul.f32 30.0, %v489_v41 }
 0x141   : > { %v505_v44 = vadd.f32 %v504_v43, %v503_v42 }
 0x143   : > { %506 = vadd.xlane.f32.xlu1 %v505_v44 }
 0x1d0   : > { %v507_v45 = vpop.xlane.xlu1 %506 }
 0x1d1   : > { %v508_v46 = vmul.f32 %v507_v45, %v507_v45  ;;  %v518_v54 = vmul.f32 0.9553365, %v507_v45  ;;  %v709_v56 = vadd.f32 -0.08865606, %v507_v45  ;;  %vm524_vm4 = vcmp.gt.f32.partialorder %v507_v45, -0.9553365 }
 0x1d3   : > { %v509_v47 = vsub.f32 1.0, %v508_v46  ;;  %v523_v59 = vmul.f32 30.0, %v709_v56 }
 0x1d5   : > { %v510_v48 = vmax.f32 %v509_v47, 0.0 }
 0x1d7   : > { %848 = vrsqrt.f32 %v510_v48  ;;  %vm513_vm2 = vcmp.eq.f32.partialorder %v510_v48, inf  ;;  %v516_v51 = vand.u32 2147483648, %v510_v48  ;;  %vm515_vm3 = vcmp.eq.f32.partialorder %v510_v48, 0.0 }
 0x1e1   : > { %v849_v49 = vpop.eup %848 }
 0x1e2   : > { %v512_v50 = vmul.f32 %v849_v49, %v510_v48 }
 0x1e4   : > { %v514_v52 = vsel %vm513_vm2, %v510_v48, %v512_v50 }
 0x1e5   : > { %v517_v53 = vsel %vm515_vm3, %v516_v51, %v514_v52 }
 0x1e6   : > { %v519_v55 = vmul.f32 0.29552022, %v517_v53 }
 0x1e8   : > { %v520_v57 = vsub.f32 %v518_v54, %v519_v55 }
 0x1ea   : > { %v521_v58 = vmul.f32 30.0, %v520_v57 }
 0x1ec   : > { %v525_v62 = vsel %vm524_vm4, %v521_v58, %v523_v59 }
 0x1ed   : > { %v528_v63 = vsel %vm501_vm0, %v525_v62, %v526_v60  ;;  %v529_v0 = vsel %vm502_vm1, %v525_v62, %v527_v61 }
 0x1ee   : > { %530 = vst [vmem:[%s309_s10] sm:$0xff] %v528_v63  ;;  %531 = vst [vmem:[%s309_s10 + $0x8] sm:$0xff] %v529_v0 }
 0x1ef   : > { %893 = shalt.err (!%p890_p10)
}
 0x1f0   : > { %s894_s25 = scalar_lea.hbm %s1241_s27, 256  ;;  %s898_s7 = scalar_lea.hbm %s1312_s5, 1024 }
 0x1f1   : > { %p895_p11 = scmp.ne.s32.totalorder %s1241_s27, %s894_s25  ;;  %p899_p13 = scmp.lt.u32.totalorder %s1241_s27, %s1312_s5 }
 0x1f2   : > { %p900_p12 = scmp.lt.u32.totalorder %s898_s7, %s894_s25  ;;  %p902_p2 = scmp.lt.u32.totalorder %s894_s25, %s1241_s27 }
 0x1f3   : > { %p896_p6 = pnand %p895_p11, %p1325_p4 }
 0x1f4   : > { %p901_p7 = por %p900_p12, %p899_p13 }
 0x1f5   : > { %p897_p9 = pneg %p896_p6 }
 0x1f6   : > { %p903_p0 = por %p902_p2, %p901_p7 }
 0x1f8   : > { %p904_p1 = pnand %p903_p0, %p897_p9 }
 0x1fa   : > { %907 = shalt.err (!%p904_p1)
}
 0x1fb   : > { %719 = dma.vmem_to_hbm [thread:$0]  (%p1325_p4), %s1243_s6, 256, %s1241_s27, %s533_s12  }
 0x1fc PF: > { %p730_p5 = scmp.ge.s32.totalorder %s1002_s28, 2  ;;  %s561_s11 = sand.u32 1, %s962_s18  }
 0x1fd   : > { %p1326_p8 = scmp.ne.s32.totalorder %s1323_s21, 0  ;;  %s562_s30 = scalar_lea.sflag [#allocation4], %s561_s11 }
 0x1ff   : > { %p726_p3 = pnand %p730_p5, %p1326_p8 }
 0x201   : > { %957 = dma.done.wait (!%p726_p3), %s562_s30, 256  }
 0x202   : > { %959 = vsyncadd (!%p726_p3), %s562_s30, 4294967040  ;;  %s21_s28 = sadd.s32 1, %s1002_s28   ;;  %s1327_s25 = sld [smem:[#allocation8_spill]] }
 0x203   : > { %p18_p10 = scmp.ge.s32.totalorder %s21_s28, 6   ;;  %s1328_s15 = sld [smem:[#allocation9_spill]] }
 0x204   : > { %s1329_s27 = sld [smem:[#allocation10_spill]]  ;;  %s1330_s18 = smov %s966_s19 }
 0x205   : > { %s1331_s19 = smov %s970_s20  ;;  %s1332_s20 = smov %s1130_s17 }
 0x206   : > { %s1333_s21 = smov %s978_s22  ;;  %s1334_s22 = smov %s982_s23 }
 0x207   : > { %s1335_s23 = smov %s1127_s16  ;;  %s1336_s24 = smov %s994_s26 }
 0x208   :  { %20 = sbr.rel (!%p18_p10) target bundleno = 9 (0x9), region = 97 }
 0x209   : > { %s1337_s26 = smov %s1328_s15 }
 0x20f   :  { %567 = vsyncpa [#allocation3], 1 }
 0x210   :  { %569 = vsyncpa [#allocation3 + $0x1], 1 }
 0x211   :  { %570 = vsyncpa [#allocation4], 1 }
 0x212   :  { %572 = vsyncpa [#allocation4 + $0x1], 1 }

</bundles_post_ra>
